<compile_context>
chip_gen: v5e
topology: v5e:2x2
jax: 0.10.0
libtpu: 0.0.40
codegen_flags: <defaults>
</compile_context>

<pallas_src>
import jax
import jax.numpy as jnp
from jax.experimental import pallas as pl
from jax.experimental.pallas import tpu as pltpu

B = 2       # batch
S = 8       # sequence length
D = 768     # roberta hidden size (fixed by Linear(768, 100))
H = 100     # MLP hidden size (logical)
HP = 128    # MLP hidden size padded to the 128-lane width


def _round_up(x, m):
    return (x + m - 1) // m * m


def _num_tensorcores_per_chip():
    """Best-effort TensorCores-per-chip count (v7x has 2; v5e/v6e have 1)."""
    try:
        kind = jax.devices()[0].device_kind.lower()
        if "v7" in kind:
            return 2
    except Exception:
        pass
    return 1


def _pick_tm(b, n_tc):
    """Batch tile: a multiple of 16 (bf16 sublane packing).

    v7x (2 TCs): keep the grid >= 2 steps whenever the batch allows so
    dimension_semantics=("parallel",) shards it across both TensorCores.
    v5e/v6e (1 TC): tm=256 fills the 256-wide MXU M dim and minimizes the
    ~0.35 us/step grid overhead.  VMEM is never the constraint here.
    """
    if n_tc >= 2 and b >= 32:
        return min(128, _round_up(pl.cdiv(b, 2), 16))
    if b >= 256:
        return 256
    return _round_up(min(b, 256), 16)


def ses_head_kernel(cls_ref, w1_ref, b1_ref, w2_ref, b2_ref, w3_ref, b3_ref, o_ref):
    # Linear(768, 128pad) + ReLU — bf16 operands, f32 accumulation on the MXU.
    h1 = jnp.dot(cls_ref[...], w1_ref[...],
                 preferred_element_type=jnp.float32) + b1_ref[...]
    h1 = jnp.maximum(h1, 0.0)                       # ReLU kept in f32 (v5e VPU has no bf16)

    # Linear(128, 128) + ReLU
    h2 = jnp.dot(h1.astype(jnp.bfloat16), w2_ref[...],
                 preferred_element_type=jnp.float32) + b2_ref[...]
    h2 = jnp.maximum(h2, 0.0)

    # Linear(128, 1): VPU multiply + XLU lane reduction (free slots next to the
    # MXU work) instead of an N=1 MXU pass.
    o_ref[...] = jnp.sum(h2 * w3_ref[...], axis=-1, keepdims=True) + b3_ref[0]


def ses_classifier_head(hidden, w1, b1, w2, b2, w3row, b3):
    """hidden: [B, S, 768] (roberta last_hidden_state, bf16). Returns logits [B]."""
    b_, s_, d_ = hidden.shape
    hp = w1.shape[1]

    # bf16 activation (no-op if the backbone already emits bf16).
    hidden = hidden.astype(jnp.bfloat16)
    # CLS selection folded into the BlockSpec: (B, S, D) viewed as (B, S*D)
    # (contiguous, metadata-only); the DMA pulls only token-0's 768 columns.
    hidden2d = hidden.reshape(b_, s_ * d_)

    tm = _pick_tm(b_, _num_tensorcores_per_chip())
    grid = (pl.cdiv(b_, tm),)

    flops = 2 * b_ * (d_ * hp + hp * hp) + 3 * b_ * hp
    bytes_accessed = (b_ * d_ * 2                     # cls tiles (bf16)
                      + (d_ * hp + hp * hp) * 2       # bf16 weights
                      + (3 * hp + 1) * 4              # f32 biases + w3 row + b3
                      + b_ * 4)                       # f32 logits out
    cost = pl.CostEstimate(flops=flops, transcendentals=0,
                           bytes_accessed=bytes_accessed)

    out = pl.pallas_call(
        ses_head_kernel,
        out_shape=jax.ShapeDtypeStruct((b_, 1), jnp.float32),
        grid=grid,
        in_specs=[
            pl.BlockSpec((tm, d_), lambda i: (i, 0)),            # CLS tile     bf16
            pl.BlockSpec((d_, hp), lambda i: (0, 0)),            # W1           bf16
            pl.BlockSpec((1, hp), lambda i: (0, 0)),             # b1           f32
            pl.BlockSpec((hp, hp), lambda i: (0, 0)),            # W2           bf16
            pl.BlockSpec((1, hp), lambda i: (0, 0)),             # b2           f32
            pl.BlockSpec((1, hp), lambda i: (0, 0)),             # W3 as a row  f32
            pl.BlockSpec(memory_space=pltpu.MemorySpace.SMEM),   # b3 scalar
        ],
        out_specs=pl.BlockSpec((tm, 1), lambda i: (i, 0)),
        compiler_params=pltpu.CompilerParams(
            dimension_semantics=("parallel",)),                  # shards batch across v7x TCs
        cost_estimate=cost,
    )(hidden2d, w1, b1, w2, b2, w3row, b3)

    # logits = self.linear(hidden).squeeze()
    return out[:, 0]


def init_params(key):
    """Deterministic synthetic parameters matching the nn.Linear shapes."""
    k1, k2, k3, k4, k5, k6 = jax.random.split(key, 6)
    # weights stored as [in, out] (transpose of torch's [out, in]); math identical
    w1 = jax.random.normal(k1, (D, H), jnp.float32) * 0.02
    b1 = jax.random.normal(k2, (H,), jnp.float32) * 0.02
    w2 = jax.random.normal(k3, (H, H), jnp.float32) * 0.02
    b2 = jax.random.normal(k4, (H,), jnp.float32) * 0.02
    w3 = jax.random.normal(k5, (H,), jnp.float32) * 0.02
    b3 = jax.random.normal(k6, (1,), jnp.float32) * 0.02
    return w1, b1, w2, b2, w3, b3


def pack_params(w1, b1, w2, b2, w3, b3):
    """Zero-pad head width 100 -> 128 (lane-dense tiles) and cast MXU weights to bf16.

    Padding is exact: ReLU(0) = 0 and zero rows/columns of w2/w3 contribute nothing.
    """
    w1p = jnp.zeros((D, HP), jnp.float32).at[:, :H].set(w1).astype(jnp.bfloat16)
    b1p = jnp.zeros((1, HP), jnp.float32).at[0, :H].set(b1)
    w2p = jnp.zeros((HP, HP), jnp.float32).at[:H, :H].set(w2).astype(jnp.bfloat16)
    b2p = jnp.zeros((1, HP), jnp.float32).at[0, :H].set(b2)
    w3p = jnp.zeros((1, HP), jnp.float32).at[0, :H].set(w3)   # (H,1) weight as a row
    return w1p, b1p, w2p, b2p, w3p, b3


def reference(hidden, w1, b1, w2, b2, w3, b3):
    """Pure-JAX reference with the same bf16 operand rounding as the kernel."""
    hi = jax.lax.Precision.HIGHEST
    cls = hidden[:, 0, :].astype(jnp.float32)
    w1f = w1.astype(jnp.bfloat16).astype(jnp.float32)
    w2f = w2.astype(jnp.bfloat16).astype(jnp.float32)
    h1 = jnp.maximum(jnp.dot(cls, w1f, precision=hi) + b1[None, :], 0.0)
    h1 = h1.astype(jnp.bfloat16).astype(jnp.float32)
    h2 = jnp.maximum(jnp.dot(h1, w2f, precision=hi) + b2[None, :], 0.0)
    return jnp.dot(h2, w3, precision=hi) + b3[0]


if __name__ == "__main__":
    key = jax.random.PRNGKey(0)
    k_h, k_p = jax.random.split(key)

    # stand-in for roberta(texts, masks)[0] -> last_hidden_state [B, S, 768],
    # emitted by the backbone in bf16.
    hidden = jax.random.normal(k_h, (B, S, D), jnp.float32).astype(jnp.bfloat16)
    params = init_params(k_p)
    packed = pack_params(*params)

    logits = ses_classifier_head(hidden, *packed)
    logits = jax.block_until_ready(logits)

    ref = reference(hidden, *params)
    assert logits.shape == (B,)
    assert jnp.allclose(logits, ref, atol=2e-3, rtol=2e-3), (logits, ref)

    print("KERNEL_OK")
</pallas_src>

<mosaic_0001>
module attributes {stable_mosaic.version = 11 : i64} {
  func.func @ses_head_kernel(%arg0: i32, %arg1: memref<16x768xbf16, #tpu.memory_space<vmem>>, %arg2: memref<768x128xbf16, #tpu.memory_space<vmem>>, %arg3: memref<1x128xf32, #tpu.memory_space<vmem>>, %arg4: memref<128x128xbf16, #tpu.memory_space<vmem>>, %arg5: memref<1x128xf32, #tpu.memory_space<vmem>>, %arg6: memref<1x128xf32, #tpu.memory_space<vmem>>, %arg7: memref<1xf32, #tpu.memory_space<smem>>, %arg8: memref<16x1xf32, #tpu.memory_space<vmem>>) attributes {dimension_semantics = [#tpu.dimension_semantics<parallel>], iteration_bounds = array<i64: 1>, scalar_prefetch = 0 : i64, scratch_operands = 0 : i64, tpu.core_type = #tpu.core_type<tc>, window_params = [{transform_indices = @transform_0, window_bounds = array<i64: 16, 768>}, {pipeline_mode = #tpu.pipeline_mode<synchronous>, transform_indices = @transform_1, window_bounds = array<i64: 768, 128>}, {pipeline_mode = #tpu.pipeline_mode<synchronous>, transform_indices = @transform_2, window_bounds = array<i64: 1, 128>}, {pipeline_mode = #tpu.pipeline_mode<synchronous>, transform_indices = @transform_3, window_bounds = array<i64: 128, 128>}, {pipeline_mode = #tpu.pipeline_mode<synchronous>, transform_indices = @transform_4, window_bounds = array<i64: 1, 128>}, {pipeline_mode = #tpu.pipeline_mode<synchronous>, transform_indices = @transform_5, window_bounds = array<i64: 1, 128>}, {transform_indices = @transform_6, window_bounds = array<i64: 1>}, {transform_indices = @transform_7, window_bounds = array<i64: 16, 1>}]} {
    %c0 = arith.constant 0 : index
    %c0_0 = arith.constant 0 : index
    %0 = vector.load %arg1[%c0, %c0_0] : memref<16x768xbf16, #tpu.memory_space<vmem>>, vector<16x768xbf16>
    %c0_1 = arith.constant 0 : index
    %c0_2 = arith.constant 0 : index
    %1 = vector.load %arg2[%c0_1, %c0_2] : memref<768x128xbf16, #tpu.memory_space<vmem>>, vector<768x128xbf16>
    %cst = arith.constant dense<0.000000e+00> : vector<16x128xf32>
    %2 = tpu.matmul %0, %1, %cst {dimension_numbers = #tpu.dot_dimension_numbers<[1], [0], [0], [1], [0, 0, 1, 1], [], []>} : vector<16x768xbf16>, vector<768x128xbf16>, vector<16x128xf32> -> vector<16x128xf32>
    %c0_3 = arith.constant 0 : index
    %c0_4 = arith.constant 0 : index
    %3 = vector.load %arg3[%c0_3, %c0_4] : memref<1x128xf32, #tpu.memory_space<vmem>>, vector<1x128xf32>
    %4 = vector.broadcast %3 : vector<1x128xf32> to vector<16x128xf32>
    %5 = arith.addf %2, %4 : vector<16x128xf32>
    %cst_5 = arith.constant 0.000000e+00 : f32
    %6 = vector.broadcast %cst_5 : f32 to vector<16x128xf32>
    %7 = arith.maximumf %5, %6 : vector<16x128xf32>
    %8 = arith.truncf %7 : vector<16x128xf32> to vector<16x128xbf16>
    %c0_6 = arith.constant 0 : index
    %c0_7 = arith.constant 0 : index
    %9 = vector.load %arg4[%c0_6, %c0_7] : memref<128x128xbf16, #tpu.memory_space<vmem>>, vector<128x128xbf16>
    %cst_8 = arith.constant dense<0.000000e+00> : vector<16x128xf32>
    %10 = tpu.matmul %8, %9, %cst_8 {dimension_numbers = #tpu.dot_dimension_numbers<[1], [0], [0], [1], [0, 0, 1, 1], [], []>} : vector<16x128xbf16>, vector<128x128xbf16>, vector<16x128xf32> -> vector<16x128xf32>
    %c0_9 = arith.constant 0 : index
    %c0_10 = arith.constant 0 : index
    %11 = vector.load %arg5[%c0_9, %c0_10] : memref<1x128xf32, #tpu.memory_space<vmem>>, vector<1x128xf32>
    %12 = vector.broadcast %11 : vector<1x128xf32> to vector<16x128xf32>
    %13 = arith.addf %10, %12 : vector<16x128xf32>
    %cst_11 = arith.constant 0.000000e+00 : f32
    %14 = vector.broadcast %cst_11 : f32 to vector<16x128xf32>
    %15 = arith.maximumf %13, %14 : vector<16x128xf32>
    %c0_12 = arith.constant 0 : index
    %c0_13 = arith.constant 0 : index
    %16 = vector.load %arg6[%c0_12, %c0_13] : memref<1x128xf32, #tpu.memory_space<vmem>>, vector<1x128xf32>
    %17 = vector.broadcast %16 : vector<1x128xf32> to vector<16x128xf32>
    %18 = arith.mulf %15, %17 : vector<16x128xf32>
    %cst_14 = arith.constant dense<0.000000e+00> : vector<16xf32>
    %19 = vector.multi_reduction <add>, %18, %cst_14 [1] : vector<16x128xf32> to vector<16xf32>
    %20 = vector.shape_cast %19 : vector<16xf32> to vector<16x1xf32>
    %c0_15 = arith.constant 0 : index
    %21 = memref.load %arg7[%c0_15] : memref<1xf32, #tpu.memory_space<smem>>
    %22 = vector.broadcast %21 : f32 to vector<16x1xf32>
    %23 = arith.addf %20, %22 : vector<16x1xf32>
    %c0_16 = arith.constant 0 : index
    %c0_17 = arith.constant 0 : index
    %24 = vector.load %arg8[%c0_16, %c0_17] : memref<16x1xf32, #tpu.memory_space<vmem>>, vector<16x1xf32>
    tpu.vector_store %arg8[%c0_16, %c0_17], %23 {strides = array<i32>} : memref<16x1xf32, #tpu.memory_space<vmem>>, vector<16x1xf32>,
    return
  }
  func.func @transform_0(%arg0: i32) -> (i32, i32) {
    %c0_i32 = arith.constant 0 : i32
    %c0_i32_0 = arith.constant 0 : i32
    return %arg0, %c0_i32 : i32, i32
  }
  func.func @transform_1(%arg0: i32) -> (i32, i32) {
    %c0_i32 = arith.constant 0 : i32
    %c0_i32_0 = arith.constant 0 : i32
    %c0_i32_1 = arith.constant 0 : i32
    return %c0_i32, %c0_i32_0 : i32, i32
  }
  func.func @transform_2(%arg0: i32) -> (i32, i32) {
    %c0_i32 = arith.constant 0 : i32
    %c0_i32_0 = arith.constant 0 : i32
    %c0_i32_1 = arith.constant 0 : i32
    return %c0_i32, %c0_i32_0 : i32, i32
  }
  func.func @transform_3(%arg0: i32) -> (i32, i32) {
    %c0_i32 = arith.constant 0 : i32
    %c0_i32_0 = arith.constant 0 : i32
    %c0_i32_1 = arith.constant 0 : i32
    return %c0_i32, %c0_i32_0 : i32, i32
  }
  func.func @transform_4(%arg0: i32) -> (i32, i32) {
    %c0_i32 = arith.constant 0 : i32
    %c0_i32_0 = arith.constant 0 : i32
    %c0_i32_1 = arith.constant 0 : i32
    return %c0_i32, %c0_i32_0 : i32, i32
  }
  func.func @transform_5(%arg0: i32) -> (i32, i32) {
    %c0_i32 = arith.constant 0 : i32
    %c0_i32_0 = arith.constant 0 : i32
    %c0_i32_1 = arith.constant 0 : i32
    return %c0_i32, %c0_i32_0 : i32, i32
  }
  func.func @transform_6(%arg0: i32) -> i32 {
    %c0_i32 = arith.constant 0 : i32
    %c0_i32_0 = arith.constant 0 : i32
    return %c0_i32 : i32
  }
  func.func @transform_7(%arg0: i32) -> (i32, i32) {
    %c0_i32 = arith.constant 0 : i32
    %c0_i32_0 = arith.constant 0 : i32
    return %arg0, %c0_i32 : i32, i32
  }
}

</mosaic_0001>

<bundles_post_ra>
// kernel: tpu_custom_call.1
= control target key start
LH: loop header
LB: loop body
LE: loop exit
PB: predicated region body
PF: predicated region fallthrough
CT: control target
= control target key end

     0   :  { %13 = vsyncpa [#allocation4], 0  ;;  %s1175_s0 = inlined_call_operand.hbm [shape: bf16[2,6144], index: 0, kind: input, shape index: {}]   ;;  %s1176_s1 = inlined_call_operand.hbm [shape: bf16[768,128], index: 1, kind: input, shape index: {}]   ;;  %s1177_s2 = inlined_call_operand.vmem [shape: f32[1,128], index: 2, kind: input, shape index: {}]   ;;  %s1178_s3 = inlined_call_operand.hbm [shape: bf16[128,128], index: 3, kind: input, shape index: {}]   ;;  %s1179_s4 = inlined_call_operand.vmem [shape: f32[1,128], index: 4, kind: input, shape index: {}]   ;;  %s1180_s5 = inlined_call_operand.vmem [shape: f32[1,128], index: 5, kind: input, shape index: {}]   ;;  %s1181_s6 = inlined_call_operand.<no memory space> [shape: f32[1], index: 6, kind: input, shape index: {}]   ;;  %s1182_s7 = inlined_call_operand.vmem [shape: f32[2,1], index: 7, kind: output, shape index: {}]  }
   0x1   :  { %14 = vsyncpa [#allocation6], 0  ;;  %s32_s26 = sshll.u32 %s1176_s1, 4  ;;  %s33_s26 = int_to_ptr.hbm [resolvable:$true] %s32_s26 }
   0x2   :  { %18 = vsyncadd [#allocation4], 672  ;;  %s1103_s27 = smov [#allocation5]   ;;  %s19_s8 = sshll.u32 %s1175_s0, 4  ;;  %s20_s8 = int_to_ptr.hbm [resolvable:$true] %s19_s8 }
   0x3   :  { %s34_s28 = sshll.u32 %s1103_s27, 4  ;;  %s1104_s9 = smov 64   ;;  %s35_s28 = int_to_ptr.vmem [resolvable:$true] %s34_s28 }
   0x4   :  { %s1105_s10 = smov 4   ;;  %s1106_s11 = smov [#allocation3]  }
   0x5   :  { %40 = dma.hbm_to_vmem [thread:$0]  %s33_s26, 6144, %s35_s28, [#allocation6], %s1104_s9, %s1104_s9, %s1105_s10  }
   0x6   :  { %s21_s12 = sshll.u32 %s1106_s11, 4  ;;  %s47_s1 = sshll.u32 %s1178_s3, 4  ;;  %s22_s12 = int_to_ptr.vmem [resolvable:$true] %s21_s12  ;;  %s48_s1 = int_to_ptr.hbm [resolvable:$true] %s47_s1 }
   0x7   :  { %s1107_s15 = smov 768   ;;  %s1108_s16 = smov 96  }
   0x8   :  { %s1109_s17 = smov 6   ;;  %s1110_s18 = smov [#allocation7]  }
   0x9   :  { %27 = dma.hbm_to_vmem [thread:$0]  %s20_s8, 96, %s22_s12, [#allocation4], %s1107_s15, %s1108_s16, %s1109_s17  }
   0xa   :  { %s49_s19 = sshll.u32 %s1110_s18, 4  ;;  %s50_s19 = int_to_ptr.vmem [resolvable:$true] %s49_s19 }
   0xb   :  { %55 = dma.hbm_to_vmem [thread:$0]  %s48_s1, 1024, %s50_s19, [#allocation6], %s1104_s9, %s1104_s9, %s1105_s10  }
   0xc   :  { %1099 = dma.done.wait [#allocation4], 768  }
   0xd   :  { %1100 = vsyncadd [#allocation4], 4294966528 }
   0xe   :  { %1101 = dma.done.wait [#allocation6], 7168  }
   0xf   :  { %1102 = vsyncadd [#allocation6], 4294960128  ;;  %v967_v0 = vld [vmem:[#allocation5 + $0x38] sm:$0xff]  ;;  %v966_v4 = vld [vmem:[#allocation5 + $0x30] sm:$0xff]  ;;  %vm690_vm0 = vcmask 7168  }
  0x10   :  { %v975_v1 = vld [vmem:[#allocation5 + $0x78] sm:$0xff]  ;;  %505 = vmatpush.bf16.msra.mxu0 %v967_v0  ;;  %v974_v5 = vld [vmem:[#allocation5 + $0x70] sm:$0xff]  ;;  %v965_v8 = vld [vmem:[#allocation5 + $0x28] sm:$0xff] }
  0x11   :  { %v983_v2 = vld [vmem:[#allocation5 + $0xb8] sm:$0xff]  ;;  %519 = vmatpush.bf16.msra.mxu1 %v975_v1  ;;  %v982_v6 = vld [vmem:[#allocation5 + $0xb0] sm:$0xff]  ;;  %v973_v9 = vld [vmem:[#allocation5 + $0x68] sm:$0xff] }
  0x12   :  { %v991_v3 = vld [vmem:[#allocation5 + $0xf8] sm:$0xff]  ;;  %533 = vmatpush.bf16.msra.mxu2 %v983_v2  ;;  %v990_v7 = vld [vmem:[#allocation5 + $0xf0] sm:$0xff]  ;;  %v981_v10 = vld [vmem:[#allocation5 + $0xa8] sm:$0xff] }
  0x13   :  { %547 = vmatpush.bf16.msra.mxu3 %v991_v3  ;;  %v989_v11 = vld [vmem:[#allocation5 + $0xe8] sm:$0xff]  ;;  %v964_v12 = vld [vmem:[#allocation5 + $0x20] sm:$0xff]  ;;  %v74_v16 = vld [vmem:[#allocation3] sm:$0x3f] }
  0x14   :  { %506 = vmatpush.bf16.msra.mxu0 %v966_v4  ;;  %v972_v13 = vld [vmem:[#allocation5 + $0x60] sm:$0xff]  ;;  %v75_v17 = vld [vmem:[#allocation3 + $0x6] sm:$0x3f]  ;;  %183 = vst [vmem:[#allocation1] ss:$9 sm:$0xff] %v74_v16  ;;  %v961_v32 = vld [vmem:[#allocation5 + $0x8] sm:$0xff] }
  0x15   :  { %520 = vmatpush.bf16.msra.mxu1 %v974_v5  ;;  %v980_v14 = vld [vmem:[#allocation5 + $0xa0] sm:$0xff]  ;;  %v963_v19 = vld [vmem:[#allocation5 + $0x18] sm:$0xff]  ;;  %v78_v24 = vld [vmem:[#allocation3 + $0x18] sm:$0x3f]  ;;  %186 = vst [vmem:[#allocation1 + $0x1] ss:$9 sm:$0xff] %v75_v17 }
  0x16   :  { %534 = vmatpush.bf16.msra.mxu2 %v982_v6  ;;  %v988_v15 = vld [vmem:[#allocation5 + $0xe0] sm:$0xff]  ;;  %v971_v20 = vld [vmem:[#allocation5 + $0x58] sm:$0xff]  ;;  %v962_v25 = vld [vmem:[#allocation5 + $0x10] sm:$0xff]  ;;  %195 = vst [vmem:[#allocation1 + $0x4] ss:$9 sm:$0xff] %v78_v24 }
  0x17   :  { %548 = vmatpush.bf16.msra.mxu3 %v990_v7  ;;  %v76_v18 = vld [vmem:[#allocation3 + $0xc] sm:$0x3f]  ;;  %v77_v21 = vld [vmem:[#allocation3 + $0x12] sm:$0x3f]  ;;  %v970_v26 = vld [vmem:[#allocation5 + $0x50] sm:$0xff] }
  0x18   :  { %507 = vmatpush.bf16.msra.mxu0 %v965_v8  ;;  %v979_v22 = vld [vmem:[#allocation5 + $0x98] sm:$0xff]  ;;  %v79_v27 = vld [vmem:[#allocation3 + $0x1e] sm:$0x3f]  ;;  %189 = vst [vmem:[#allocation1 + $0x2] ss:$9 sm:$0xff] %v76_v18  ;;  %v960_v36 = vld [vmem:[#allocation5] sm:$0xff] }
  0x19   :  { %521 = vmatpush.bf16.msra.mxu1 %v973_v9  ;;  %v987_v23 = vld [vmem:[#allocation5 + $0xd8] sm:$0xff]  ;;  %192 = vst [vmem:[#allocation1 + $0x3] ss:$9 sm:$0xff] %v77_v21  ;;  %v978_v30 = vld [vmem:[#allocation5 + $0x90] sm:$0xff]  ;;  %v969_v33 = vld [vmem:[#allocation5 + $0x48] sm:$0xff] }
  0x1a   :  { %535 = vmatpush.bf16.msra.mxu2 %v981_v10  ;;  %v80_v28 = vld [vmem:[#allocation3 + $0x24] sm:$0x3f]  ;;  %v81_v29 = vld [vmem:[#allocation3 + $0x2a] sm:$0x3f]  ;;  %198 = vst [vmem:[#allocation1 + $0x5] ss:$9 sm:$0xff] %v79_v27 }
  0x1b   :  { %549 = vmatpush.bf16.msra.mxu3 %v989_v11  ;;  %v986_v31 = vld [vmem:[#allocation5 + $0xd0] sm:$0xff]  ;;  %201 = vst [vmem:[#allocation1 + $0x6] ss:$9 sm:$0xff] %v80_v28  ;;  %v977_v34 = vld [vmem:[#allocation5 + $0x88] sm:$0xff]  ;;  %v968_v37 = vld [vmem:[#allocation5 + $0x40] sm:$0xff] }
  0x1c   :  { %508 = vmatpush.bf16.msra.mxu0 %v964_v12  ;;  %204 = vst [vmem:[#allocation1 + $0x7] ss:$9 sm:$0xff] %v81_v29  ;;  %v985_v35 = vld [vmem:[#allocation5 + $0xc8] sm:$0xff]  ;;  %v999_v38 = vld [vmem:[#allocation5 + $0x138] sm:$0xff]  ;;  %v976_v40 = vld [vmem:[#allocation5 + $0x80] sm:$0xff] }
  0x1d   :  { %522 = vmatpush.bf16.msra.mxu1 %v972_v13  ;;  %v1007_v39 = vld [vmem:[#allocation5 + $0x178] sm:$0xff]  ;;  %v984_v41 = vld [vmem:[#allocation5 + $0xc0] sm:$0xff]  ;;  %v998_v44 = vld [vmem:[#allocation5 + $0x130] sm:$0xff] }
  0x1e   :  { %536 = vmatpush.bf16.msra.mxu2 %v980_v14  ;;  %v1006_v45 = vld [vmem:[#allocation5 + $0x170] sm:$0xff]  ;;  %v997_v48 = vld [vmem:[#allocation5 + $0x128] sm:$0xff]  ;;  %v996_v50 = vld [vmem:[#allocation5 + $0x120] sm:$0xff] }
  0x1f   :  { %550 = vmatpush.bf16.msra.mxu3 %v988_v15  ;;  %v1005_v49 = vld [vmem:[#allocation5 + $0x168] sm:$0xff]  ;;  %v1004_v51 = vld [vmem:[#allocation5 + $0x160] sm:$0xff]  ;;  %v995_v52 = vld [vmem:[#allocation5 + $0x118] sm:$0xff] }
  0x20   :  { %509 = vmatpush.bf16.msra.mxu0 %v963_v19  ;;  %v1003_v53 = vld [vmem:[#allocation5 + $0x158] sm:$0xff]  ;;  %v994_v54 = vld [vmem:[#allocation5 + $0x110] sm:$0xff]  ;;  %v993_v56 = vld [vmem:[#allocation5 + $0x108] sm:$0xff] }
  0x21   :  { %523 = vmatpush.bf16.msra.mxu1 %v971_v20  ;;  %v1002_v55 = vld [vmem:[#allocation5 + $0x150] sm:$0xff]  ;;  %v1001_v57 = vld [vmem:[#allocation5 + $0x148] sm:$0xff]  ;;  %v992_v58 = vld [vmem:[#allocation5 + $0x100] sm:$0xff] }
  0x22   :  { %537 = vmatpush.bf16.msra.mxu2 %v979_v22  ;;  %v1000_v59 = vld [vmem:[#allocation5 + $0x140] sm:$0xff]  ;;  %v1015_v62 = vld [vmem:[#allocation7 + $0x38] sm:$0xff]  ;;  %v1014_v63 = vld [vmem:[#allocation7 + $0x30] sm:$0xff] }
  0x23   :  { %551 = vmatpush.bf16.msra.mxu3 %v987_v23  ;;  %v205_v42 = vld [vmem:[#allocation1] sm:$0xff]  ;;  %v206_v43 = vld [vmem:[#allocation1 + $0x9] sm:$0xff]  ;;  %v207_v46 = vld [vmem:[#allocation1 + $0x12] sm:$0xff] }
  0x24   :  { %510 = vmatpush.bf16.msra.mxu0 %v962_v25  ;;  %v208_v47 = vld [vmem:[#allocation1 + $0x1b] sm:$0xff]  ;;  %v209_v60 = vld [vmem:[#allocation1 + $0x24] sm:$0xff]  ;;  %v210_v61 = vld [vmem:[#allocation1 + $0x2d] sm:$0xff] }
  0x25   :  { %524 = vmatpush.bf16.msra.mxu1 %v970_v26  ;;  %v1013_v0 = vld [vmem:[#allocation7 + $0x28] sm:$0xff]  ;;  %v1012_v1 = vld [vmem:[#allocation7 + $0x20] sm:$0xff]  ;;  %v1011_v2 = vld [vmem:[#allocation7 + $0x18] sm:$0xff] }
  0x26   :  { %538 = vmatpush.bf16.msra.mxu2 %v978_v30  ;;  %v1010_v3 = vld [vmem:[#allocation7 + $0x10] sm:$0xff]  ;;  %v1009_v4 = vld [vmem:[#allocation7 + $0x8] sm:$0xff]  ;;  %v1008_v5 = vld [vmem:[#allocation7] sm:$0xff] }
  0x27   :  { %552 = vmatpush.bf16.msra.mxu3 %v986_v31  ;;  %v1024_v8 = vld [vmem:[%s1177_s2] ss:$0 sm:$0xff] }
  0x28   :  { %511 = vmatpush.bf16.msra.mxu0 %v961_v32 }
  0x29   :  { %525 = vmatpush.bf16.msra.mxu1 %v969_v33 }
  0x2a   :  { %539 = vmatpush.bf16.msra.mxu2 %v977_v34  ;;  %v1025_v34 = vld [vmem:[%s1179_s4] ss:$0 sm:$0xff] }
  0x2b   :  { %553 = vmatpush.bf16.msra.mxu3 %v985_v35 }
  0x2c   :  { %512 = vmatpush.bf16.msra.mxu0 %v960_v36 }
  0x2d   :  { %526 = vmatpush.bf16.msra.mxu1 %v968_v37  ;;  %v1026_v37 = vld [vmem:[%s1180_s5] ss:$0 sm:$0xff] }
  0x2e   :  { %540 = vmatpush.bf16.msra.mxu2 %v976_v40 }
  0x2f   :  { %554 = vmatpush.bf16.msra.mxu3 %v984_v41  ;;  %513 = vmatmul.bf16.vlgmr.msra.gmra.mxu0 %v205_v42 }
  0x30   :  { %561 = vmatpush.bf16.msrb.mxu0 %v999_v38  ;;  %527 = vmatmul.bf16.vlgmr.msra.gmra.mxu1 %v206_v43 }
  0x31   :  { %575 = vmatpush.bf16.msrb.mxu1 %v1007_v39  ;;  %541 = vmatmul.bf16.vlgmr.msra.gmra.mxu2 %v207_v46 }
  0x32   :  { %555 = vmatmul.bf16.vlgmr.msra.gmra.mxu3 %v208_v47  ;;  %660 = vmatpush.bf16.msrb.mxu2 %v1015_v62 }
  0x34   :  { %562 = vmatpush.bf16.msrb.mxu0 %v998_v44  ;;  %v687_v44 = vstv %s1181_s6 }
  0x35   :  { %576 = vmatpush.bf16.msrb.mxu1 %v1006_v45 }
  0x36   :  { %661 = vmatpush.bf16.msrb.mxu2 %v1014_v63 }
  0x38   :  { %563 = vmatpush.bf16.msrb.mxu0 %v997_v48 }
  0x39   :  { %577 = vmatpush.bf16.msrb.mxu1 %v1005_v49 }
  0x3a   :  { %662 = vmatpush.bf16.msrb.mxu2 %v1013_v0 }
  0x3c   :  { %564 = vmatpush.bf16.msrb.mxu0 %v996_v50 }
  0x3d   :  { %578 = vmatpush.bf16.msrb.mxu1 %v1004_v51 }
  0x3e   :  { %663 = vmatpush.bf16.msrb.mxu2 %v1012_v1 }
  0x40   :  { %565 = vmatpush.bf16.msrb.mxu0 %v995_v52 }
  0x41   :  { %579 = vmatpush.bf16.msrb.mxu1 %v1003_v53 }
  0x42   :  { %664 = vmatpush.bf16.msrb.mxu2 %v1011_v2 }
  0x44   :  { %566 = vmatpush.bf16.msrb.mxu0 %v994_v54 }
  0x45   :  { %580 = vmatpush.bf16.msrb.mxu1 %v1002_v55 }
  0x46   :  { %665 = vmatpush.bf16.msrb.mxu2 %v1010_v3 }
  0x48   :  { %567 = vmatpush.bf16.msrb.mxu0 %v993_v56 }
  0x49   :  { %581 = vmatpush.bf16.msrb.mxu1 %v1001_v57 }
  0x4a   :  { %666 = vmatpush.bf16.msrb.mxu2 %v1009_v4 }
  0x4c   :  { %568 = vmatpush.bf16.msrb.mxu0 %v992_v58 }
  0x4d   :  { %582 = vmatpush.bf16.msrb.mxu1 %v1000_v59 }
  0x4e   :  { %667 = vmatpush.bf16.msrb.mxu2 %v1008_v5 }
  0x4f   :  { %569 = vmatmul.bf16.vlgmr.msrb.gmra.mxu0 %v209_v60 }
  0x50   :  { %583 = vmatmul.bf16.vlgmr.msrb.gmra.mxu1 %v210_v61 }
  0xac   :  { %v514_v6 = vpop.f32.mrf.mxu0 }
  0xad   :  { %v528_v7 = vpop.f32.mrf.mxu1  ;;  %v515_v10 = vadd.f32 %v1024_v8, %v514_v6 }
  0xaf   :  { %v529_v14 = vadd.f32 %v528_v7, %v515_v10 }
  0xb4   :  { %v542_v9 = vpop.f32.mrf.mxu2  ;;  %v516_v11 = vpop.f32.mrf.mxu0 }
  0xb5   :  { %v530_v12 = vpop.f32.mrf.mxu1  ;;  %v556_v13 = vpop.f32.mrf.mxu3  ;;  %v517_v15 = vadd.f32 %v1024_v8, %v516_v11  ;;  %v543_v16 = vadd.f32 %v542_v9, %v529_v14 }
  0xb7   :  { %v531_v17 = vadd.f32 %v530_v12, %v517_v15  ;;  %v557_v21 = vadd.f32 %v556_v13, %v543_v16 }
  0xbc   :  { %v544_v18 = vpop.f32.mrf.mxu2 }
  0xbd   :  { %v545_v22 = vadd.f32 %v544_v18, %v531_v17  ;;  %v558_v23 = vpop.f32.mrf.mxu3 }
  0xbf   :  { %v559_v25 = vadd.f32 %v558_v23, %v545_v22 }
  0xcc   :  { %v570_v19 = vpop.f32.mrf.mxu0 }
  0xcd   :  { %v584_v20 = vpop.f32.mrf.mxu1  ;;  %v571_v24 = vadd.f32 %v570_v19, %v557_v21 }
  0xcf   :  { %v585_v27 = vadd.f32 %v584_v20, %v571_v24 }
  0xd1   :  { %v589_v31 = vmax.f32 %v585_v27, 0.0 }
  0xd4   :  { %v572_v26 = vpop.f32.mrf.mxu0 }
  0xd5   :  { %v573_v28 = vadd.f32 %v572_v26, %v559_v25  ;;  %v586_v29 = vpop.f32.mrf.mxu1 }
  0xd7   :  { %v587_v30 = vadd.f32 %v586_v29, %v573_v28 }
  0xd9   :  { %v590_v32 = vmax.f32 %v587_v30, 0.0 }
  0xdb   :  { %v591_v33 = vpack.c.bf16 %v590_v32, %v589_v31 }
  0xdd   :  { %668 = vmatmul.bf16.vlgmr.msrb.gmra.mxu2 %v591_v33 }
 0x160   :  { %v669_v35 = vpop.f32.mrf.mxu2 }
 0x161   :  { %v670_v36 = vadd.f32 %v1025_v34, %v669_v35 }
 0x163   :  { %v674_v38 = vmax.f32 %v670_v36, 0.0 }
 0x165   :  { %v680_v39 = vmul.f32 %v1026_v37, %v674_v38 }
 0x167   :  { %682 = vadd.xlane.f32.xlu0 %v680_v39 }
 0x168   :  { %v671_v40 = vpop.f32.mrf.mxu2 }
 0x169   :  { %v672_v41 = vadd.f32 %v1025_v34, %v671_v40 }
 0x16b   :  { %v675_v42 = vmax.f32 %v672_v41, 0.0 }
 0x16d   :  { %v681_v43 = vmul.f32 %v1026_v37, %v675_v42 }
 0x16f   :  { %684 = vadd.xlane.f32.xlu0 %v681_v43 }
 0x1da   :  { %v683_v45 = vpop.xlane.xlu0 %682 }
 0x1db   :  { %v688_v46 = vadd.f32 %v687_v44, %v683_v45 }
 0x1dd   :  { %691 = vst.msk [vmem:[#allocation8] sm:$0xff] %vm690_vm0, %v688_v46 }
 0x1e2   :  { %v685_v47 = vpop.xlane.xlu0 %684 }
 0x1e4   :  { %v711_v48 = vld [vmem:[#allocation8] sm:$0x3] }
 0x1e5   :  { %712 = vst [vmem:[%s1182_s7] sm:$0x3] %v711_v48 }
 0x1e6   :  { %730 = vsyncpa [#allocation4], 1 }
 0x1e7   :  { %731 = vsyncpa [#allocation6], 1 }

</bundles_post_ra>
